<compile_context>
chip_gen: v6e
topology: v6e:2x2x1
jax: 0.10.0
libtpu: 0.0.40
codegen_flags: <defaults>
</compile_context>

<pallas_src>
import functools

import jax
import jax.numpy as jnp
from jax.experimental import pallas as pl
from jax.experimental.pallas import tpu as pltpu


def _stacked_conv1d_kernel(x_ref, w_ref, b_ref, o_ref, buf_ref, *,
                           K, dilations, L, C, pad_max, alpha, mxu_dtype):
    """Whole StackedConv1d forward for one batch element, all layers fused.

    x_ref  : (1, L, C)                 input tile, channels-last
    w_ref  : (n_layers, K*C, C)        per-layer im2col weight (tap-major rows)
    b_ref  : (n_layers, 1, C)          per-layer bias (f32)
    o_ref  : (1, L, C)                 output tile
    buf_ref: (L + 2*pad_max, C) VMEM   zero-padded activation scratch
    """
    # Zero only the margin strips, once per grid step. They are never overwritten
    # afterwards, so they provide the conv zero-padding for every layer.
    if pad_max > 0:
        buf_ref[:pad_max, :] = jnp.zeros((pad_max, C), jnp.float32)
        buf_ref[pad_max + L:, :] = jnp.zeros((pad_max, C), jnp.float32)

    h = x_ref[0].astype(jnp.float32)                      # (L, C), resident across layers
    for li, dil in enumerate(dilations):                  # static unroll over layers
        pad_l = (K - 1) * dil // 2
        buf_ref[pad_max:pad_max + L, :] = h               # write center rows only

        # im2col: K dilated shifts concatenated along the lane axis -> ONE MXU matmul
        # with contraction depth K*C instead of K separate (L,C)x(C,C) matmuls.
        base = pad_max - pad_l
        taps = [buf_ref[base + t * dil: base + t * dil + L, :] for t in range(K)]
        xcat = jnp.concatenate(taps, axis=-1)             # (L, K*C)

        y = jnp.dot(xcat.astype(mxu_dtype), w_ref[li],
                    preferred_element_type=jnp.float32)   # (L, C), f32 accumulate
        y = y + b_ref[li]                                 # bias (1, C) broadcast, f32
        y = jnp.where(y > 0, y, alpha * y)                # LeakyReLU, f32 on the VPU
        # TODO(synk): Dropout(p) is identity for p=0.0 / eval mode; training-time
        # random dropout is not implemented here.
        h = h + y                                         # residual

    o_ref[0] = h.astype(o_ref.dtype)


def stacked_conv1d(x_ncl, params, dilations, negative_slope=0.01,
                   mxu_dtype=jnp.float32):
    """Forward of StackedConv1d.

    x_ncl    : (B, C, L)  -- PyTorch layout (Batch, Features, SeqLen)
    params   : list of (weight (C_out, C_in, K), bias (C_out,)) per layer
    dilations: list of ints, one per layer
    mxu_dtype: dtype of the MXU operands. jnp.bfloat16 gives ~2x matmul throughput on
               v6e/v7x; accumulation, bias, LeakyReLU and residual stay f32 either way
               (important on v5e which has no bf16 VPU path).
    """
    B, C, L = x_ncl.shape
    n_layers = len(params)
    assert n_layers == len(dilations)
    K = params[0][0].shape[-1]
    for (w, b), dil in zip(params, dilations):
        # Uniform kernel_size across layers (the common config); 'same' length only
        # when (K-1)*dilation is even (true for odd kernel sizes).
        assert w.shape == (C, C, K), "all layers must share features_num/kernel_size"
        assert b.shape == (C,)
        assert (K - 1) * dil % 2 == 0, "output length would differ from input"
    pad_max = max((K - 1) * d // 2 for d in dilations)

    # (C_out, C_in, K) -> (K, C_in, C_out) -> (K*C_in, C_out); stack layers so the
    # whole weight stack is DMA'd once and stays VMEM-resident (constant index_map).
    w_stack = jnp.stack(
        [jnp.transpose(w, (2, 1, 0)).reshape(K * C, C) for (w, _) in params]
    ).astype(mxu_dtype)                                        # (n_layers, K*C, C)
    b_stack = jnp.stack([b for (_, b) in params]
                        ).reshape(n_layers, 1, C).astype(jnp.float32)

    x_blc = jnp.transpose(x_ncl, (0, 2, 1))                    # (B, L, C): C on lanes

    kernel = functools.partial(
        _stacked_conv1d_kernel, K=K, dilations=tuple(dilations), L=L, C=C,
        pad_max=pad_max, alpha=negative_slope, mxu_dtype=mxu_dtype)

    out = pl.pallas_call(
        kernel,
        out_shape=jax.ShapeDtypeStruct((B, L, C), x_blc.dtype),
        grid=(B,),  # >=2 "parallel" steps so both v7x TensorCores get work
        in_specs=[
            pl.BlockSpec((1, L, C), lambda b: (b, 0, 0)),
            pl.BlockSpec((n_layers, K * C, C), lambda b: (0, 0, 0)),  # weights resident
            pl.BlockSpec((n_layers, 1, C), lambda b: (0, 0, 0)),
        ],
        out_specs=pl.BlockSpec((1, L, C), lambda b: (b, 0, 0)),
        scratch_shapes=[pltpu.VMEM((L + 2 * pad_max, C), jnp.float32)],
        compiler_params=pltpu.CompilerParams(
            dimension_semantics=("parallel",)),
    )(x_blc, w_stack, b_stack)

    return jnp.transpose(out, (0, 2, 1))                       # back to (B, C, L)


def _reference(x_ncl, params, dilations, negative_slope=0.01):
    """Plain-JAX reference using lax.conv_general_dilated (NCL)."""
    x = x_ncl
    for (w, b), dil in zip(params, dilations):
        K = w.shape[-1]
        pad = (K - 1) * dil // 2
        y = jax.lax.conv_general_dilated(
            x, w, window_strides=(1,), padding=[(pad, pad)],
            rhs_dilation=(dil,),
            dimension_numbers=("NCH", "OIH", "NCH"))
        y = y + b[None, :, None]
        y = jnp.where(y > 0, y, negative_slope * y)
        x = x + y
    return x


if __name__ == "__main__":
    # Module config: features_num=32, layers_n=2, kernel_size=3, dilation=[1, 2]
    features_num = 32
    layers_n = 2
    kernel_size = 3
    dilations = [1, 2]

    B, L = 2, 16

    key = jax.random.PRNGKey(0)
    kx, *kp = jax.random.split(key, 1 + 2 * layers_n)

    x = jax.random.normal(kx, (B, features_num, L), dtype=jnp.float32)

    params = []
    for i in range(layers_n):
        # Deterministic synthetic init (PyTorch shapes: weight (C_out, C_in, K), bias (C_out,))
        w = 0.1 * jax.random.normal(
            kp[2 * i], (features_num, features_num, kernel_size), dtype=jnp.float32)
        b = 0.1 * jax.random.normal(kp[2 * i + 1], (features_num,), dtype=jnp.float32)
        params.append((w, b))

    out = stacked_conv1d(x, params, dilations)
    out = jax.block_until_ready(out)

    ref = _reference(x, params, dilations)
    assert out.shape == (B, features_num, L)
    assert jnp.allclose(out, ref, atol=1e-5, rtol=1e-5), "mismatch vs reference"

    print("KERNEL_OK")
</pallas_src>

<mosaic_0001>
module attributes {stable_mosaic.version = 11 : i64} {
  func.func @_stacked_conv1d_kernel(%arg0: i32, %arg1: memref<1x16x32xf32, #tpu.memory_space<vmem>>, %arg2: memref<2x96x32xf32, #tpu.memory_space<vmem>>, %arg3: memref<2x1x32xf32, #tpu.memory_space<vmem>>, %arg4: memref<1x16x32xf32, #tpu.memory_space<vmem>>, %arg5: memref<20x32xf32, #tpu.memory_space<vmem>>) attributes {dimension_semantics = [#tpu.dimension_semantics<parallel>], iteration_bounds = array<i64: 2>, scalar_prefetch = 0 : i64, scratch_operands = 1 : i64, tpu.core_type = #tpu.core_type<tc>, window_params = [{transform_indices = @transform_0, window_bounds = array<i64: 1, 16, 32>}, {pipeline_mode = #tpu.pipeline_mode<synchronous>, transform_indices = @transform_1, window_bounds = array<i64: 2, 96, 32>}, {pipeline_mode = #tpu.pipeline_mode<synchronous>, transform_indices = @transform_2, window_bounds = array<i64: 2, 1, 32>}, {transform_indices = @transform_3, window_bounds = array<i64: 1, 16, 32>}]} {
    %cst = arith.constant 0.000000e+00 : f32
    %0 = vector.broadcast %cst : f32 to vector<2x32xf32>
    %c0 = arith.constant 0 : index
    %c0_0 = arith.constant 0 : index
    %1 = vector.load %arg5[%c0, %c0_0] : memref<20x32xf32, #tpu.memory_space<vmem>>, vector<2x32xf32>
    tpu.vector_store %arg5[%c0, %c0_0], %0 {strides = array<i32>} : memref<20x32xf32, #tpu.memory_space<vmem>>, vector<2x32xf32>,
    %cst_1 = arith.constant 0.000000e+00 : f32
    %2 = vector.broadcast %cst_1 : f32 to vector<2x32xf32>
    %c18 = arith.constant 18 : index
    %c0_2 = arith.constant 0 : index
    %3 = vector.load %arg5[%c18, %c0_2] : memref<20x32xf32, #tpu.memory_space<vmem>>, vector<2x32xf32>
    tpu.vector_store %arg5[%c18, %c0_2], %2 {strides = array<i32>} : memref<20x32xf32, #tpu.memory_space<vmem>>, vector<2x32xf32>,
    %c0_3 = arith.constant 0 : index
    %c0_4 = arith.constant 0 : index
    %c0_5 = arith.constant 0 : index
    %4 = vector.load %arg1[%c0_3, %c0_4, %c0_5] : memref<1x16x32xf32, #tpu.memory_space<vmem>>, vector<1x16x32xf32>
    %5 = vector.shape_cast %4 : vector<1x16x32xf32> to vector<16x32xf32>
    %c2 = arith.constant 2 : index
    %c0_6 = arith.constant 0 : index
    %6 = vector.load %arg5[%c2, %c0_6] : memref<20x32xf32, #tpu.memory_space<vmem>>, vector<16x32xf32>
    tpu.vector_store %arg5[%c2, %c0_6], %5 {strides = array<i32>} : memref<20x32xf32, #tpu.memory_space<vmem>>, vector<16x32xf32>,
    %c1 = arith.constant 1 : index
    %c0_7 = arith.constant 0 : index
    %7 = vector.load %arg5[%c1, %c0_7] : memref<20x32xf32, #tpu.memory_space<vmem>>, vector<16x32xf32>
    %c2_8 = arith.constant 2 : index
    %c0_9 = arith.constant 0 : index
    %8 = vector.load %arg5[%c2_8, %c0_9] : memref<20x32xf32, #tpu.memory_space<vmem>>, vector<16x32xf32>
    %c3 = arith.constant 3 : index
    %c0_10 = arith.constant 0 : index
    %9 = vector.load %arg5[%c3, %c0_10] : memref<20x32xf32, #tpu.memory_space<vmem>>, vector<16x32xf32>
    %10 = tpu.concatenate %7, %8, %9 in 1 : vector<16x32xf32>, vector<16x32xf32>, vector<16x32xf32> -> vector<16x96xf32>
    %c0_11 = arith.constant 0 : index
    %c0_12 = arith.constant 0 : index
    %c0_13 = arith.constant 0 : index
    %11 = vector.load %arg2[%c0_11, %c0_12, %c0_13] : memref<2x96x32xf32, #tpu.memory_space<vmem>>, vector<1x96x32xf32>
    %12 = vector.shape_cast %11 : vector<1x96x32xf32> to vector<96x32xf32>
    %cst_14 = arith.constant dense<0.000000e+00> : vector<16x32xf32>
    %13 = tpu.matmul %10, %12, %cst_14 {dimension_numbers = #tpu.dot_dimension_numbers<[1], [0], [0], [1], [0, 0, 1, 1], [], []>} : vector<16x96xf32>, vector<96x32xf32>, vector<16x32xf32> -> vector<16x32xf32>
    %c0_15 = arith.constant 0 : index
    %c0_16 = arith.constant 0 : index
    %c0_17 = arith.constant 0 : index
    %14 = vector.load %arg3[%c0_15, %c0_16, %c0_17] : memref<2x1x32xf32, #tpu.memory_space<vmem>>, vector<1x1x32xf32>
    %15 = vector.shape_cast %14 : vector<1x1x32xf32> to vector<1x32xf32>
    %16 = vector.broadcast %15 : vector<1x32xf32> to vector<16x32xf32>
    %17 = arith.addf %13, %16 : vector<16x32xf32>
    %cst_18 = arith.constant 0.000000e+00 : f32
    %18 = vector.broadcast %cst_18 : f32 to vector<16x32xf32>
    %19 = arith.cmpf ogt, %17, %18 : vector<16x32xf32>
    %cst_19 = arith.constant 0.00999999977 : f32
    %20 = vector.broadcast %cst_19 : f32 to vector<16x32xf32>
    %21 = arith.mulf %20, %17 : vector<16x32xf32>
    %22 = arith.select %19, %17, %21 : vector<16x32xi1>, vector<16x32xf32>
    %23 = arith.addf %5, %22 : vector<16x32xf32>
    %c2_20 = arith.constant 2 : index
    %c0_21 = arith.constant 0 : index
    %24 = vector.load %arg5[%c2_20, %c0_21] : memref<20x32xf32, #tpu.memory_space<vmem>>, vector<16x32xf32>
    tpu.vector_store %arg5[%c2_20, %c0_21], %23 {strides = array<i32>} : memref<20x32xf32, #tpu.memory_space<vmem>>, vector<16x32xf32>,
    %c0_22 = arith.constant 0 : index
    %c0_23 = arith.constant 0 : index
    %25 = vector.load %arg5[%c0_22, %c0_23] : memref<20x32xf32, #tpu.memory_space<vmem>>, vector<16x32xf32>
    %c2_24 = arith.constant 2 : index
    %c0_25 = arith.constant 0 : index
    %26 = vector.load %arg5[%c2_24, %c0_25] : memref<20x32xf32, #tpu.memory_space<vmem>>, vector<16x32xf32>
    %c4 = arith.constant 4 : index
    %c0_26 = arith.constant 0 : index
    %27 = vector.load %arg5[%c4, %c0_26] : memref<20x32xf32, #tpu.memory_space<vmem>>, vector<16x32xf32>
    %28 = tpu.concatenate %25, %26, %27 in 1 : vector<16x32xf32>, vector<16x32xf32>, vector<16x32xf32> -> vector<16x96xf32>
    %c1_27 = arith.constant 1 : index
    %c0_28 = arith.constant 0 : index
    %c0_29 = arith.constant 0 : index
    %29 = vector.load %arg2[%c1_27, %c0_28, %c0_29] : memref<2x96x32xf32, #tpu.memory_space<vmem>>, vector<1x96x32xf32>
    %30 = vector.shape_cast %29 : vector<1x96x32xf32> to vector<96x32xf32>
    %cst_30 = arith.constant dense<0.000000e+00> : vector<16x32xf32>
    %31 = tpu.matmul %28, %30, %cst_30 {dimension_numbers = #tpu.dot_dimension_numbers<[1], [0], [0], [1], [0, 0, 1, 1], [], []>} : vector<16x96xf32>, vector<96x32xf32>, vector<16x32xf32> -> vector<16x32xf32>
    %c1_31 = arith.constant 1 : index
    %c0_32 = arith.constant 0 : index
    %c0_33 = arith.constant 0 : index
    %32 = vector.load %arg3[%c1_31, %c0_32, %c0_33] : memref<2x1x32xf32, #tpu.memory_space<vmem>>, vector<1x1x32xf32>
    %33 = vector.shape_cast %32 : vector<1x1x32xf32> to vector<1x32xf32>
    %34 = vector.broadcast %33 : vector<1x32xf32> to vector<16x32xf32>
    %35 = arith.addf %31, %34 : vector<16x32xf32>
    %cst_34 = arith.constant 0.000000e+00 : f32
    %36 = vector.broadcast %cst_34 : f32 to vector<16x32xf32>
    %37 = arith.cmpf ogt, %35, %36 : vector<16x32xf32>
    %cst_35 = arith.constant 0.00999999977 : f32
    %38 = vector.broadcast %cst_35 : f32 to vector<16x32xf32>
    %39 = arith.mulf %38, %35 : vector<16x32xf32>
    %40 = arith.select %37, %35, %39 : vector<16x32xi1>, vector<16x32xf32>
    %41 = arith.addf %23, %40 : vector<16x32xf32>
    %c0_36 = arith.constant 0 : index
    %c0_37 = arith.constant 0 : index
    %c0_38 = arith.constant 0 : index
    %42 = vector.load %arg4[%c0_36, %c0_37, %c0_38] : memref<1x16x32xf32, #tpu.memory_space<vmem>>, vector<1x16x32xf32>
    %43 = vector.shape_cast %42 : vector<1x16x32xf32> to vector<16x32xf32>
    %44 = vector.shape_cast %41 : vector<16x32xf32> to vector<1x16x32xf32>
    tpu.vector_store %arg4[%c0_36, %c0_37, %c0_38], %44 {strides = array<i32>} : memref<1x16x32xf32, #tpu.memory_space<vmem>>, vector<1x16x32xf32>,
    return
  }
  func.func @transform_0(%arg0: i32) -> (i32, i32, i32) {
    %c0_i32 = arith.constant 0 : i32
    %c0_i32_0 = arith.constant 0 : i32
    %c0_i32_1 = arith.constant 0 : i32
    return %arg0, %c0_i32, %c0_i32_0 : i32, i32, i32
  }
  func.func @transform_1(%arg0: i32) -> (i32, i32, i32) {
    %c0_i32 = arith.constant 0 : i32
    %c0_i32_0 = arith.constant 0 : i32
    %c0_i32_1 = arith.constant 0 : i32
    %c0_i32_2 = arith.constant 0 : i32
    return %c0_i32, %c0_i32_0, %c0_i32_1 : i32, i32, i32
  }
  func.func @transform_2(%arg0: i32) -> (i32, i32, i32) {
    %c0_i32 = arith.constant 0 : i32
    %c0_i32_0 = arith.constant 0 : i32
    %c0_i32_1 = arith.constant 0 : i32
    %c0_i32_2 = arith.constant 0 : i32
    return %c0_i32, %c0_i32_0, %c0_i32_1 : i32, i32, i32
  }
  func.func @transform_3(%arg0: i32) -> (i32, i32, i32) {
    %c0_i32 = arith.constant 0 : i32
    %c0_i32_0 = arith.constant 0 : i32
    %c0_i32_1 = arith.constant 0 : i32
    return %arg0, %c0_i32, %c0_i32_0 : i32, i32, i32
  }
}

</mosaic_0001>

<bundles_post_ra>
// kernel: tpu_custom_call.1
= control target key start
LH: loop header
LB: loop body
LE: loop exit
PB: predicated region body
PF: predicated region fallthrough
CT: control target
= control target key end

     0   :  { %8 = vsyncpa [#allocation4], 0  ;;  %s990_s0 = inlined_call_operand.vmem [shape: f32[2,16,32], index: 0, kind: input, shape index: {}]   ;;  %s991_s1 = inlined_call_operand.vmem [shape: f32[2,96,32], index: 1, kind: input, shape index: {}]   ;;  %s992_s2 = inlined_call_operand.vmem [shape: f32[2,1,32], index: 2, kind: input, shape index: {}]   ;;  %s993_s3 = inlined_call_operand.hbm [shape: f32[2,16,32], index: 3, kind: output, shape index: {}]  }
   0x1   :  { %10 = vsyncpa [#allocation4 + $0x1], 0  ;;  %s776_s12 = smov 0   ;;  %s778_s13 = smov 0  }
   0x2   :  { %s780_s14 = smov 0   ;;  %s782_s15 = smov 0  }
   0x3 LB: > { %s797_s16 = sadd.s32 4294967295, %s748_s15   ;;  %s529_s17 = sadd.s32 4294967294, %s748_s15   ;;  %s748_s15 = sphi %s782_s15, %s999_s15   ;;  %s744_s14 = sphi %s780_s14, %s998_s14   ;;  %s740_s13 = sphi %s778_s13, %s997_s13   ;;  %s736_s12 = sphi %s776_s12, %s996_s12  }
   0x4   : > { %s801_s18 = sadd.s32 1, %s748_s15   ;;  %s91_s19 = sadd.s32 1, %s744_s14 }
   0x5   : > { %s88_s20 = ssub.s32 %s748_s15, %s801_s18  ;;  %p101_p0 = scmp.ne.s32.totalorder %s744_s14, %s740_s13 }
   0x6   : > { %p89_p1 = scmp.eq.s32.totalorder %s88_s20, 0  ;;  %p102_p2 = scmp.eq.s32.totalorder %s797_s16, 1 }
   0x7   : > { %p107_p3 = scmp.ne.s32.totalorder %s740_s13, %s736_s12  ;;  %p108_p4 = scmp.eq.s32.totalorder %s529_s17, 1 }
   0x8   : > { %s812_s21 = scalar_select %p89_p1, %s744_s14, %s91_s19  }
   0x9   : > { %p814_p5 = por %p102_p2, %p101_p0  ;;  %p818_p6 = por %p108_p4, %p107_p3 }
   0xa   : > { %p532_p7 = scmp.ge.s32.totalorder %s748_s15, 1  ;;  %p140_p8 = scmp.lt.s32.totalorder %s748_s15, 3 }
   0xc   : > { %p141_p9 = pnand %p532_p7, %p140_p8 }
   0xd   : > { %p164_p10 = scmp.lt.s32.totalorder (!%p141_p9), %s797_s16, 1  ;;  %s751_s27 = smov (!%p141_p9), 32  }
   0xe   : > { %144 = sbr.rel (%p141_p9) target bundleno = 700 (0x2bc), region = 32  ;;  %s561_s6 = sshll.u32 (!%p141_p9), %s797_s16, 8 }
   0xf   : > { %s944_s11 = scalar_lea.hbm (!%p141_p9), %s993_s3, %s561_s6  ;;  %s753_s19 = smov (!%p141_p9), [#allocation3]  }
  0x10   : > { %s692_s20 = sshll.u32 (!%p141_p9), %s753_s19, 4  ;;  %s693_s20 = int_to_ptr.vmem [resolvable:$false] %s692_s20 }
  0x11   : > { %s694_s24 = scalar_lea.vmem (!%p141_p9), %s693_s20, 512 }
  0x13   : > { %vm169_vm0 = vcmask 254976   ;;  %v215_v0 = vld [vmem:[%s991_s1 + $0x58] sm:$0xff]  ;;  %v750_v1 = vmov 0.0   ;;  %v214_v2 = vld [vmem:[%s991_s1 + $0x50] sm:$0xff]  ;;  %s165_s28 = scalar_select %p164_p10, %s797_s16, 1  ;;  %v213_v3 = vld [vmem:[%s991_s1 + $0x48] sm:$0xff] }
  0x14   : > { %170 = vst.msk [vmem:[#allocation2] sm:$0x3] %vm169_vm0, %v750_v1  ;;  %171 = vst.msk [vmem:[#allocation2 + $0x12] sm:$0x3] %vm169_vm0, %v750_v1  ;;  %590 = vmatprep.subr.mxu0 %v215_v0  ;;  %vm174_vm1 = vcmask 261120   ;;  %v212_v4 = vld [vmem:[%s991_s1 + $0x40] sm:$0xff] }
  0x15   : > { %591 = vmatpush3.msra.mxu0 %v215_v0  ;;  %s560_s4 = sshll.u32 %s165_s28, 4  ;;  %v211_v7 = vld [vmem:[%s991_s1 + $0x38] sm:$0xff]  ;;  %v210_v8 = vld [vmem:[%s991_s1 + $0x30] sm:$0xff]  ;;  %v209_v9 = vld [vmem:[%s991_s1 + $0x28] sm:$0xff]  ;;  %s752_s28 = smov 64   ;;  %vm201_vm2 = vcmask 523264  }
  0x16   : > { %592 = vmatprep.subr.mxu0 %v214_v2  ;;  %s168_s9 = scalar_lea.vmem %s990_s0, %s560_s4  ;;  %v208_v10 = vld [vmem:[%s991_s1 + $0x20] sm:$0xff]  ;;  %v207_v13 = vld [vmem:[%s991_s1 + $0x18] sm:$0xff]  ;;  %v206_v16 = vld [vmem:[%s991_s1 + $0x10] sm:$0xff]  ;;  %vm223_vm3 = vcmask 785408  }
  0x17   : > { %593 = vmatpush3.msra.mxu0 %v214_v2  ;;  %v841_v5 = vld [vmem:[%s168_s9] sm:$0xff]  ;;  %v843_v6 = vld [vmem:[%s168_s9 + $0x8] sm:$0xff]  ;;  %v550_v29 = vld [vmem:[%s991_s1 + $0xb8] sm:$0xff] }
  0x18   : > { %594 = vmatprep.subr.mxu0 %v213_v3  ;;  %175 = vst.msk [vmem:[#allocation2 + $0x2] sm:$0xff] %vm174_vm1, %v841_v5  ;;  %176 = vst.msk [vmem:[#allocation2 + $0xa] sm:$0xff] %vm174_vm1, %v843_v6  ;;  %v205_v17 = vld [vmem:[%s991_s1 + $0x8] sm:$0xff]  ;;  %v204_v18 = vld [vmem:[%s991_s1] sm:$0xff]  ;;  %617 = vmatprep.subr.mxu1 %v550_v29 }
  0x19   : > { %595 = vmatpush3.msra.mxu0 %v213_v3  ;;  %v549_v30 = vld [vmem:[%s991_s1 + $0xb0] sm:$0xff]  ;;  %618 = vmatpush3.msra.mxu1 %v550_v29  ;;  %v548_v31 = vld [vmem:[%s991_s1 + $0xa8] sm:$0xff]  ;;  %v547_v32 = vld [vmem:[%s991_s1 + $0xa0] sm:$0xff] }
  0x1a   : > { %596 = vmatprep.subr.mxu0 %v212_v4  ;;  %619 = vmatprep.subr.mxu1 %v549_v30  ;;  %v546_v33 = vld [vmem:[%s991_s1 + $0x98] sm:$0xff]  ;;  %v545_v34 = vld [vmem:[%s991_s1 + $0x90] sm:$0xff]  ;;  %v544_v35 = vld [vmem:[%s991_s1 + $0x88] sm:$0xff] }
  0x1b   : > { %597 = vmatpush3.msra.mxu0 %v212_v4  ;;  %620 = vmatpush3.msra.mxu1 %v549_v30  ;;  %v543_v36 = vld [vmem:[%s991_s1 + $0x80] sm:$0xff]  ;;  %v542_v41 = vld [vmem:[%s991_s1 + $0x78] sm:$0xff]  ;;  %v541_v46 = vld [vmem:[%s991_s1 + $0x70] sm:$0xff] }
  0x1c   : > { %598 = vmatprep.subr.mxu0 %v211_v7  ;;  %621 = vmatprep.subr.mxu1 %v548_v31  ;;  %v536_v37 = vld [vmem:[%s992_s2] ss:$0 sm:$0xff]  ;;  %v540_v49 = vld [vmem:[%s991_s1 + $0x68] sm:$0xff]  ;;  %v552_v2 = vld [vmem:[%s992_s2 + $0x1] ss:$0 sm:$0xff] }
  0x1d   : > { %599 = vmatpush3.msra.mxu0 %v211_v7  ;;  %622 = vmatpush3.msra.mxu1 %v548_v31  ;;  %v539_v51 = vld [vmem:[%s991_s1 + $0x60] sm:$0xff] }
  0x1e   : > { %600 = vmatprep.subr.mxu0 %v210_v8  ;;  %623 = vmatprep.subr.mxu1 %v547_v32 }
  0x1f   : > { %601 = vmatpush3.msra.mxu0 %v210_v8  ;;  %v179_v11 = vld [vmem:[#allocation2 + $0x2] sm:$0xff]  ;;  %v180_v14 = vld [vmem:[#allocation2 + $0xa] sm:$0xff]  ;;  %624 = vmatpush3.msra.mxu1 %v547_v32 }
  0x20   : > { %602 = vmatprep.subr.mxu0 %v209_v9  ;;  %v181_v12 = vld [vmem:[#allocation2 + $0x3] sm:$0xff]  ;;  %185 = vrot.lane.b32.xlu0 %v179_v11, %s751_s27  ;;  %v182_v15 = vld [vmem:[#allocation2 + $0xb] sm:$0xff] }
  0x21   : > { %603 = vmatpush3.msra.mxu0 %v209_v9  ;;  %193 = vrot.lane.b32.xlu1 %v181_v12, %s752_s28  ;;  %v177_v19 = vld [vmem:[#allocation2 + $0x1] sm:$0xff]  ;;  %v178_v24 = vld [vmem:[#allocation2 + $0x9] sm:$0xff] }
  0x22   : > { %604 = vmatprep.subr.mxu0 %v208_v10  ;;  %625 = vmatprep.subr.mxu1 %v546_v33 }
  0x23   : > { %605 = vmatpush3.msra.mxu0 %v208_v10  ;;  %626 = vmatpush3.msra.mxu1 %v546_v33 }
  0x24   : > { %606 = vmatprep.subr.mxu0 %v207_v13  ;;  %187 = vrot.lane.b32.xlu0 %v180_v14, %s751_s27 }
  0x25   : > { %195 = vrot.lane.b32.xlu1 %v182_v15, %s752_s28  ;;  %607 = vmatpush3.msra.mxu0 %v207_v13 }
  0x26   : > { %608 = vmatprep.subr.mxu0 %v206_v16  ;;  %627 = vmatprep.subr.mxu1 %v545_v34 }
  0x27   : > { %609 = vmatpush3.msra.mxu0 %v206_v16  ;;  %628 = vmatpush3.msra.mxu1 %v545_v34 }
  0x28   : > { %610 = vmatprep.subr.mxu0 %v205_v17  ;;  %629 = vmatprep.subr.mxu1 %v544_v35 }
  0x29   : > { %611 = vmatpush3.msra.mxu0 %v205_v17  ;;  %630 = vmatpush3.msra.mxu1 %v544_v35 }
  0x2a   : > { %612 = vmatprep.subr.mxu0 %v204_v18  ;;  %631 = vmatprep.subr.mxu1 %v543_v36 }
  0x2b   : > { %613 = vmatpush3.msra.mxu0 %v204_v18  ;;  %632 = vmatpush3.msra.mxu1 %v543_v36 }
  0x2c   : > { %633 = vmatprep.subr.mxu1 %v542_v41 }
  0x2d   : > { %634 = vmatpush3.msra.mxu1 %v542_v41 }
  0x2e   : > { %635 = vmatprep.subr.mxu1 %v541_v46 }
  0x2f   : > { %636 = vmatpush3.msra.mxu1 %v541_v46 }
  0x30   : > { %637 = vmatprep.subr.mxu1 %v540_v49 }
  0x31   : > { %638 = vmatpush3.msra.mxu1 %v540_v49 }
  0x32   : > { %639 = vmatprep.subr.mxu1 %v539_v51 }
  0x33   : > { %640 = vmatpush3.msra.mxu1 %v539_v51 }
  0x92   : > { %v186_v20 = vpop.permute.xlu0 %185 }
  0x93   : > { %v194_v21 = vpop.permute.xlu1 %193  ;;  %v199_v22 = vsel %vm174_vm1, %v177_v19, %v186_v20 }
  0x94   : > { %v202_v23 = vsel %vm201_vm2, %v199_v22, %v194_v21 }
  0x95   : > { %614 = vmatprep.mubr.msk.f32.mxu0 %vm223_vm3, %v202_v23 }
  0x96   : > { %v188_v25 = vpop.permute.xlu0 %187 }
  0x97   : > { %v196_v26 = vpop.permute.xlu1 %195  ;;  %v200_v27 = vsel %vm174_vm1, %v178_v24, %v188_v25 }
  0x98   : > { %v203_v28 = vsel %vm201_vm2, %v200_v27, %v196_v26 }
  0x99   : > { %615 = vmatmul.mubr.msk.f32.vlgmr.msra.gmra.mxu0 %vm223_vm3, %v203_v28 }
 0x159   : > { %v616_v38 = vpop.f32.mrf.mxu0 }
 0x15a   : > { %v302_v39 = vadd.f32 %v616_v38, %v536_v37 }
 0x15b   : > { %v296_v40 = vpop.f32.mrf.mxu0 }
 0x15c   : > { %vm306_vm4 = vcmp.gt.f32.partialorder %v302_v39, 0.0  ;;  %v308_v42 = vmul.f32 0.01, %v302_v39  ;;  %v297_v43 = vadd.f32 %v536_v37, %v296_v40 }
 0x15e   : > { %v310_v44 = vsel %vm306_vm4, %v302_v39, %v308_v42  ;;  %vm305_vm5 = vcmp.gt.f32.partialorder %v297_v43, 0.0  ;;  %v307_v45 = vmul.f32 0.01, %v297_v43 }
 0x15f   : > { %v312_v47 = vadd.f32 %v310_v44, %v843_v6 }
 0x160   : > { %v309_v48 = vsel %vm305_vm5, %v297_v43, %v307_v45 }
 0x161   : > { %314 = vst.msk [vmem:[#allocation2 + $0xa] sm:$0xff] %vm174_vm1, %v312_v47  ;;  %v311_v50 = vadd.f32 %v309_v48, %v841_v5 }
 0x163   : > { %313 = vst.msk [vmem:[#allocation2 + $0x2] sm:$0xff] %vm174_vm1, %v311_v50 }
 0x168   : > { %v318_v52 = vld [vmem:[#allocation2 + $0xa] sm:$0xff] }
 0x169   : > { %325 = vrot.lane.b32.xlu1 %v318_v52, %s751_s27  ;;  %v320_v54 = vld [vmem:[#allocation2 + $0xc] sm:$0xff] }
 0x16a   : > { %v317_v53 = vld [vmem:[#allocation2 + $0x2] sm:$0xff] }
 0x16b   : > { %323 = vrot.lane.b32.xlu0 %v317_v53, %s751_s27  ;;  %v319_v55 = vld [vmem:[#allocation2 + $0x4] sm:$0xff]  ;;  %s161_s27 = sand.u32 1, %s740_s13  }
 0x16c   : > { %v315_v58 = vld [vmem:[#allocation2] sm:$0xff]  ;;  %v316_v60 = vld [vmem:[#allocation2 + $0x8] sm:$0xff]  ;;  %s950_s16 = scalar_lea.sflag [#allocation4], %s161_s27 }
 0x16d   : > { %333 = vrot.lane.b32.xlu1 %v320_v54, %s752_s28 }
 0x16f   : > { %331 = vrot.lane.b32.xlu0 %v319_v55, %s752_s28  ;;  %s533_s28 = sshll.u32 %s161_s27, 4 }
 0x170   : > { %s163_s7 = scalar_lea.vmem [#allocation3], %s533_s28 }
 0x171   : > { %s467_s8 = sshll.u32 %s163_s7, 4  ;;  %s946_s8 = int_to_ptr.vmem [resolvable:$true] %s467_s8 }
 0x172   : > { %s688_s17 = scalar_lea.vmem %s946_s8, 256  ;;  %p695_p0 = scmp.lt.s32.totalorder %s946_s8, %s693_s20 }
 0x173   : > { %p689_p11 = scmp.ne.s32.totalorder %s946_s8, %s688_s17  ;;  %p696_p1 = scmp.lt.s32.totalorder %s694_s24, %s688_s17 }
 0x175   : > { %p690_p12 = pnand %p689_p11, %p814_p5  ;;  %p697_p2 = por %p696_p1, %p695_p0 }
 0x177   : > { %p691_p13 = pneg %p690_p12 }
 0x179   : > { %p698_p3 = pnand %p697_p2, %p691_p13 }
 0x1db   : > { %v326_v56 = vpop.permute.xlu1 %325 }
 0x1dc   : > { %v338_v63 = vsel %vm174_vm1, %v316_v60, %v326_v56 }
 0x1dd   : > { %v324_v57 = vpop.permute.xlu0 %323 }
 0x1de   : > { %v337_v61 = vsel %vm174_vm1, %v315_v58, %v324_v57 }
 0x1df   : > { %v334_v59 = vpop.permute.xlu1 %333 }
 0x1e0   : > { %v340_v1 = vsel %vm201_vm2, %v338_v63, %v334_v59 }
 0x1e1   : > { %v332_v62 = vpop.permute.xlu0 %331 }
 0x1e2   : > { %v339_v0 = vsel %vm201_vm2, %v337_v61, %v332_v62 }
 0x1e3   : > { %641 = vmatprep.mubr.msk.f32.mxu1 %vm223_vm3, %v339_v0 }
 0x1e4   : > { %642 = vmatmul.mubr.msk.f32.vlgmr.msra.gmra.mxu1 %vm223_vm3, %v340_v1 }
 0x2a4   : > { %v643_v3 = vpop.f32.mrf.mxu1 }
 0x2a5   : > { %v440_v4 = vadd.f32 %v643_v3, %v552_v2 }
 0x2a6   : > { %v434_v5 = vpop.f32.mrf.mxu1 }
 0x2a7   : > { %vm444_vm6 = vcmp.gt.f32.partialorder %v440_v4, 0.0  ;;  %v446_v6 = vmul.f32 0.01, %v440_v4  ;;  %v435_v7 = vadd.f32 %v552_v2, %v434_v5 }
 0x2a9   : > { %v448_v8 = vsel %vm444_vm6, %v440_v4, %v446_v6  ;;  %vm443_vm7 = vcmp.gt.f32.partialorder %v435_v7, 0.0  ;;  %v445_v9 = vmul.f32 0.01, %v435_v7 }
 0x2aa   : > { %v450_v10 = vadd.f32 %v448_v8, %v312_v47 }
 0x2ab   : > { %v447_v11 = vsel %vm443_vm7, %v435_v7, %v445_v9 }
 0x2ac   : > { %452 = vst.msk [vmem:[%s163_s7 + $0x8] sm:$0xff] %vm174_vm1, %v450_v10  ;;  %v449_v12 = vadd.f32 %v447_v11, %v311_v50 }
 0x2ae   : > { %451 = vst.msk [vmem:[%s163_s7] sm:$0xff] %vm174_vm1, %v449_v12 }
 0x2af   : > { %701 = shalt.err (!%p698_p3)
}
 0x2b0   : > { %s702_s25 = scalar_lea.hbm %s944_s11, 256  ;;  %s706_s30 = scalar_lea.hbm %s993_s3, 512 }
 0x2b1   : > { %p703_p4 = scmp.ne.s32.totalorder %s944_s11, %s702_s25  ;;  %p707_p9 = scmp.lt.s32.totalorder %s944_s11, %s993_s3 }
 0x2b2   : > { %p708_p10 = scmp.lt.s32.totalorder %s706_s30, %s702_s25 }
 0x2b3   : > { %p704_p7 = pnand %p703_p4, %p814_p5 }
 0x2b4   : > { %p709_p11 = por %p708_p10, %p707_p9 }
 0x2b5   : > { %p705_p8 = pneg %p704_p7 }
 0x2b7   : > { %p710_p12 = pnand %p709_p11, %p705_p8 }
 0x2b9   : > { %713 = shalt.err (!%p710_p12)
}
 0x2ba   : > { %s754_s4 = smov 128   ;;  %s755_s5 = smov 8  }
 0x2bb   : > { %644 = dma.vmem_to_hbm [thread:$0]  (%p814_p5), %s946_s8, 256, %s944_s11, %s950_s16, %s754_s4, %s754_s4, %s755_s5  }
 0x2bc PF: > { %p650_p13 = scmp.ge.s32.totalorder %s748_s15, 2  ;;  %s482_s6 = sand.u32 1, %s736_s12  }
 0x2bd   : > { %s483_s7 = scalar_lea.sflag [#allocation4], %s482_s6 }
 0x2be   : > { %p647_p0 = pnand %p650_p13, %p818_p6 }
 0x2c0   : > { %p648_p1 = pneg %p647_p0 }
 0x2c2   : > { %731 = dma.done.wait (%p648_p1), %s483_s7, 256  }
 0x2c3   : > { %733 = vsyncadd (%p648_p1), %s483_s7, 4294967040  ;;  %p13_p2 = scmp.ge.s32.totalorder %s801_s18, 4   ;;  %s996_s12 = smov %s740_s13 }
 0x2c4   : > { %s997_s13 = smov %s744_s14  ;;  %s998_s14 = smov %s812_s21 }
 0x2c5   : > { %s999_s15 = smov %s801_s18  ;;  %15 = sbr.rel (!%p13_p2) target bundleno = 3 (0x3), region = 69 }
 0x2ca   :  { %488 = vsyncpa [#allocation4], 1 }
 0x2cb   :  { %490 = vsyncpa [#allocation4 + $0x1], 1 }

</bundles_post_ra>
